<compile_context>
chip_gen: v5e
topology: v5e:2x2
jax: 0.10.0
libtpu: 0.0.40
codegen_flags: <defaults>
</compile_context>

<pallas_src>
import functools

import jax
import jax.numpy as jnp
from jax import lax
from jax.experimental import pallas as pl
from jax.experimental.pallas import tpu as pltpu


def fused_cross_attn_kernel(x_ref, ctx_ref, wq_ref, wk_ref, wv_ref,
                            wo_ref, bo_ref, o_ref, *, heads, dim_head):
    # Per grid step b:
    #   x_ref:   (1, N, dim)            f32
    #   ctx_ref: (1, M, context_dim)    f32
    #   wq_ref:  (dim, inner)           bf16  (pre-scaled by dim_head**-0.5)
    #   wk_ref:  (context_dim, inner)   bf16
    #   wv_ref:  (context_dim, inner)   bf16
    #   wo_ref:  (inner, dim)           bf16
    #   bo_ref:  (1, dim)               f32
    #   o_ref:   (1, N, dim)
    x = x_ref[0].astype(jnp.bfloat16)        # (N, dim)
    ctx = ctx_ref[0].astype(jnp.bfloat16)    # (M, context_dim)

    # Merged, lane-dense (inner_dim = heads*dim_head wide) projections:
    # one MXU pass each instead of per-head 64-wide matmuls.
    q_all = jnp.dot(x, wq_ref[...],
                    preferred_element_type=jnp.float32).astype(jnp.bfloat16)
    k_all = jnp.dot(ctx, wk_ref[...],
                    preferred_element_type=jnp.float32).astype(jnp.bfloat16)
    v_all = jnp.dot(ctx, wv_ref[...],
                    preferred_element_type=jnp.float32).astype(jnp.bfloat16)

    n = x_ref.shape[1]
    dim = o_ref.shape[2]
    acc = jnp.zeros((n, dim), jnp.float32)

    # Static unroll over heads (heads is small). The to_out Linear is fused
    # here: each head's output is immediately contracted against its slice of
    # W_out and accumulated in f32 — everything stays in VMEM.
    for h in range(heads):
        s = h * dim_head
        q = q_all[:, s:s + dim_head]         # (N, dh) bf16
        k = k_all[:, s:s + dim_head]         # (M, dh) bf16
        v = v_all[:, s:s + dim_head]         # (M, dh) bf16

        # Contract last dim of q against last dim of k (no k.T materialized).
        sim = lax.dot_general(q, k, (((1,), (1,)), ((), ())),
                              preferred_element_type=jnp.float32)   # (N, M)
        # numerically stable softmax in f32 (scale already folded into Wq)
        sim = sim - jnp.max(sim, axis=-1, keepdims=True)
        p = jnp.exp(sim)
        attn = p * pl.reciprocal(jnp.sum(p, axis=-1, keepdims=True),
                                 approx=True)

        out_h = jnp.dot(attn.astype(jnp.bfloat16), v,
                        preferred_element_type=jnp.float32)          # (N, dh)
        acc += jnp.dot(out_h.astype(jnp.bfloat16),
                       wo_ref[s:s + dim_head, :],
                       preferred_element_type=jnp.float32)           # (N, dim)

    o_ref[0] = (acc + bo_ref[...]).astype(o_ref.dtype)


def prepare_params(params, *, heads, dim_head):
    """One-time weight re-layout (outside the hot path).

    PyTorch Linear weights are (out_features, in_features); we transpose to
    (in, out), fold the softmax scale into Wq, split Wkv, and cast the MXU
    weights to bfloat16.
    """
    inner_dim = heads * dim_head
    scale = dim_head ** (-0.5)
    wq = (params["to_q_w"] * scale).T.astype(jnp.bfloat16)     # (dim, inner)
    wkv_t = params["to_kv_w"].T                                # (cdim, 2*inner)
    wk = wkv_t[:, :inner_dim].astype(jnp.bfloat16)             # (cdim, inner)
    wv = wkv_t[:, inner_dim:].astype(jnp.bfloat16)             # (cdim, inner)
    wo = params["to_out_w"].T.astype(jnp.bfloat16)             # (inner, dim)
    bo = params["to_out_b"].reshape(1, -1).astype(jnp.float32) # (1, dim)
    return {"wq": wq, "wk": wk, "wv": wv, "wo": wo, "bo": bo}


def cross_attention(x, context, prep, *, heads, dim_head):
    """Forward pass matching the PyTorch CrossAttention module."""
    B, N, dim = x.shape
    _, M, context_dim = context.shape
    inner_dim = heads * dim_head

    kernel = functools.partial(fused_cross_attn_kernel,
                               heads=heads, dim_head=dim_head)
    return pl.pallas_call(
        kernel,
        out_shape=jax.ShapeDtypeStruct((B, N, dim), x.dtype),
        grid_spec=pltpu.PrefetchScalarGridSpec(
            num_scalar_prefetch=0,
            grid=(B,),
            in_specs=[
                pl.BlockSpec((1, N, dim), lambda b: (b, 0, 0)),
                pl.BlockSpec((1, M, context_dim), lambda b: (b, 0, 0)),
                pl.BlockSpec((dim, inner_dim), lambda b: (0, 0)),
                pl.BlockSpec((context_dim, inner_dim), lambda b: (0, 0)),
                pl.BlockSpec((context_dim, inner_dim), lambda b: (0, 0)),
                pl.BlockSpec((inner_dim, dim), lambda b: (0, 0)),
                pl.BlockSpec((1, dim), lambda b: (0, 0)),
            ],
            out_specs=pl.BlockSpec((1, N, dim), lambda b: (b, 0, 0)),
        ),
        compiler_params=pltpu.CompilerParams(
            dimension_semantics=("parallel",)),
        # TODO(synk): for large N/M re-derive block sizes for v7x's 64 MiB
        # VMEM and add a KV-tiling ("arbitrary") axis with online softmax.
    )(x, context, prep["wq"], prep["wk"], prep["wv"], prep["wo"], prep["bo"])


def reference_cross_attention(x, context, params, *, heads, dim_head):
    """Pure-JAX f32 reference of the PyTorch forward pass (for validation)."""
    B, N, dim = x.shape
    inner_dim = heads * dim_head
    scale = dim_head ** (-0.5)
    q = x @ params["to_q_w"].T                                 # (B, N, inner)
    kv = context @ params["to_kv_w"].T                         # (B, M, 2*inner)
    k, v = kv[..., :inner_dim], kv[..., inner_dim:]
    def split(t):
        b, n, _ = t.shape
        return t.reshape(b, n, heads, dim_head).transpose(0, 2, 1, 3)
    q, k, v = split(q), split(k), split(v)
    sim = jnp.einsum("bhid,bhjd->bhij", q, k) * scale
    attn = jax.nn.softmax(sim, axis=-1)
    out = jnp.einsum("bhij,bhjd->bhid", attn, v)
    out = out.transpose(0, 2, 1, 3).reshape(B, N, inner_dim)
    return out @ params["to_out_w"].T + params["to_out_b"]


if __name__ == "__main__":
    # Small shapes consistent with the module.
    B, N, M = 2, 8, 8
    dim, context_dim = 32, 48
    heads, dim_head = 4, 64
    inner_dim = heads * dim_head

    key = jax.random.PRNGKey(0)
    kx, kc, k1, k2, k3, k4 = jax.random.split(key, 6)

    x = jax.random.normal(kx, (B, N, dim), dtype=jnp.float32)
    context = jax.random.normal(kc, (B, M, context_dim), dtype=jnp.float32)

    # Deterministic synthetic parameters (PyTorch Linear convention: (out, in)).
    params = {
        "to_q_w": jax.random.normal(k1, (inner_dim, dim), jnp.float32) * 0.05,
        "to_kv_w": jax.random.normal(k2, (2 * inner_dim, context_dim), jnp.float32) * 0.05,
        "to_out_w": jax.random.normal(k3, (dim, inner_dim), jnp.float32) * 0.05,
        "to_out_b": jax.random.normal(k4, (dim,), jnp.float32) * 0.05,
    }

    prep = prepare_params(params, heads=heads, dim_head=dim_head)
    y = cross_attention(x, context, prep, heads=heads, dim_head=dim_head)
    y = jax.block_until_ready(y)

    y_ref = reference_cross_attention(x, context, params,
                                      heads=heads, dim_head=dim_head)
    assert y.shape == (B, N, dim)
    # bf16 MXU operands + approx reciprocal => relaxed tolerance vs f32 ref.
    assert jnp.allclose(y, y_ref, atol=3e-2, rtol=3e-2), "mismatch vs reference"

    print("KERNEL_OK")
</pallas_src>

<mosaic_0001>
module attributes {stable_mosaic.version = 11 : i64} {
  func.func @fused_cross_attn_kernel(%arg0: i32, %arg1: memref<1x8x32xf32, #tpu.memory_space<vmem>>, %arg2: memref<1x8x48xf32, #tpu.memory_space<vmem>>, %arg3: memref<32x256xbf16, #tpu.memory_space<vmem>>, %arg4: memref<48x256xbf16, #tpu.memory_space<vmem>>, %arg5: memref<48x256xbf16, #tpu.memory_space<vmem>>, %arg6: memref<256x32xbf16, #tpu.memory_space<vmem>>, %arg7: memref<1x32xf32, #tpu.memory_space<vmem>>, %arg8: memref<1x8x32xf32, #tpu.memory_space<vmem>>) attributes {dimension_semantics = [#tpu.dimension_semantics<parallel>], iteration_bounds = array<i64: 2>, scalar_prefetch = 0 : i64, scratch_operands = 0 : i64, tpu.core_type = #tpu.core_type<tc>, window_params = [{transform_indices = @transform_0, window_bounds = array<i64: 1, 8, 32>}, {transform_indices = @transform_1, window_bounds = array<i64: 1, 8, 48>}, {pipeline_mode = #tpu.pipeline_mode<synchronous>, transform_indices = @transform_2, window_bounds = array<i64: 32, 256>}, {pipeline_mode = #tpu.pipeline_mode<synchronous>, transform_indices = @transform_3, window_bounds = array<i64: 48, 256>}, {pipeline_mode = #tpu.pipeline_mode<synchronous>, transform_indices = @transform_4, window_bounds = array<i64: 48, 256>}, {pipeline_mode = #tpu.pipeline_mode<synchronous>, transform_indices = @transform_5, window_bounds = array<i64: 256, 32>}, {pipeline_mode = #tpu.pipeline_mode<synchronous>, transform_indices = @transform_6, window_bounds = array<i64: 1, 32>}, {transform_indices = @transform_7, window_bounds = array<i64: 1, 8, 32>}]} {
    %c0 = arith.constant 0 : index
    %c0_0 = arith.constant 0 : index
    %c0_1 = arith.constant 0 : index
    %0 = vector.load %arg1[%c0, %c0_0, %c0_1] : memref<1x8x32xf32, #tpu.memory_space<vmem>>, vector<1x8x32xf32>
    %1 = vector.shape_cast %0 : vector<1x8x32xf32> to vector<8x32xf32>
    %2 = arith.truncf %1 : vector<8x32xf32> to vector<8x32xbf16>
    %c0_2 = arith.constant 0 : index
    %c0_3 = arith.constant 0 : index
    %c0_4 = arith.constant 0 : index
    %3 = vector.load %arg2[%c0_2, %c0_3, %c0_4] : memref<1x8x48xf32, #tpu.memory_space<vmem>>, vector<1x8x48xf32>
    %4 = vector.shape_cast %3 : vector<1x8x48xf32> to vector<8x48xf32>
    %5 = arith.truncf %4 : vector<8x48xf32> to vector<8x48xbf16>
    %c0_5 = arith.constant 0 : index
    %c0_6 = arith.constant 0 : index
    %6 = vector.load %arg3[%c0_5, %c0_6] : memref<32x256xbf16, #tpu.memory_space<vmem>>, vector<32x256xbf16>
    %cst = arith.constant dense<0.000000e+00> : vector<8x256xf32>
    %7 = tpu.matmul %2, %6, %cst {dimension_numbers = #tpu.dot_dimension_numbers<[1], [0], [0], [1], [0, 0, 1, 1], [], []>} : vector<8x32xbf16>, vector<32x256xbf16>, vector<8x256xf32> -> vector<8x256xf32>
    %8 = arith.truncf %7 : vector<8x256xf32> to vector<8x256xbf16>
    %c0_7 = arith.constant 0 : index
    %c0_8 = arith.constant 0 : index
    %9 = vector.load %arg4[%c0_7, %c0_8] : memref<48x256xbf16, #tpu.memory_space<vmem>>, vector<48x256xbf16>
    %cst_9 = arith.constant dense<0.000000e+00> : vector<8x256xf32>
    %10 = tpu.matmul %5, %9, %cst_9 {dimension_numbers = #tpu.dot_dimension_numbers<[1], [0], [0], [1], [0, 0, 1, 1], [], []>} : vector<8x48xbf16>, vector<48x256xbf16>, vector<8x256xf32> -> vector<8x256xf32>
    %11 = arith.truncf %10 : vector<8x256xf32> to vector<8x256xbf16>
    %c0_10 = arith.constant 0 : index
    %c0_11 = arith.constant 0 : index
    %12 = vector.load %arg5[%c0_10, %c0_11] : memref<48x256xbf16, #tpu.memory_space<vmem>>, vector<48x256xbf16>
    %cst_12 = arith.constant dense<0.000000e+00> : vector<8x256xf32>
    %13 = tpu.matmul %5, %12, %cst_12 {dimension_numbers = #tpu.dot_dimension_numbers<[1], [0], [0], [1], [0, 0, 1, 1], [], []>} : vector<8x48xbf16>, vector<48x256xbf16>, vector<8x256xf32> -> vector<8x256xf32>
    %14 = arith.truncf %13 : vector<8x256xf32> to vector<8x256xbf16>
    %cst_13 = arith.constant 0.000000e+00 : f32
    %15 = vector.broadcast %cst_13 : f32 to vector<8x32xf32>
    %16 = vector.extract_strided_slice %8 {offsets = [0, 0], sizes = [8, 64], strides = [1, 1]} : vector<8x256xbf16> to vector<8x64xbf16>
    %17 = vector.extract_strided_slice %11 {offsets = [0, 0], sizes = [8, 64], strides = [1, 1]} : vector<8x256xbf16> to vector<8x64xbf16>
    %18 = vector.extract_strided_slice %14 {offsets = [0, 0], sizes = [8, 64], strides = [1, 1]} : vector<8x256xbf16> to vector<8x64xbf16>
    %cst_14 = arith.constant dense<0.000000e+00> : vector<8x8xf32>
    %19 = tpu.matmul %16, %17, %cst_14 {dimension_numbers = #tpu.dot_dimension_numbers<[1], [1], [0], [0], [0, 0, 1, 0], [], []>} : vector<8x64xbf16>, vector<8x64xbf16>, vector<8x8xf32> -> vector<8x8xf32>
    %cst_15 = arith.constant dense<0xFF800000> : vector<8xf32>
    %20 = vector.multi_reduction <maximumf>, %19, %cst_15 [1] : vector<8x8xf32> to vector<8xf32>
    %21 = vector.shape_cast %20 : vector<8xf32> to vector<8x1xf32>
    %22 = vector.broadcast %21 : vector<8x1xf32> to vector<8x8xf32>
    %23 = arith.subf %19, %22 : vector<8x8xf32>
    %24 = math.exp %23 : vector<8x8xf32>
    %cst_16 = arith.constant dense<0.000000e+00> : vector<8xf32>
    %25 = vector.multi_reduction <add>, %24, %cst_16 [1] : vector<8x8xf32> to vector<8xf32>
    %26 = vector.shape_cast %25 : vector<8xf32> to vector<8x1xf32>
    %27 = tpu.reciprocal %26 {approx = true} : vector<8x1xf32> -> vector<8x1xf32>
    %28 = vector.broadcast %27 : vector<8x1xf32> to vector<8x8xf32>
    %29 = arith.mulf %24, %28 : vector<8x8xf32>
    %30 = arith.truncf %29 : vector<8x8xf32> to vector<8x8xbf16>
    %cst_17 = arith.constant dense<0.000000e+00> : vector<8x64xf32>
    %31 = tpu.matmul %30, %18, %cst_17 {dimension_numbers = #tpu.dot_dimension_numbers<[1], [0], [0], [1], [0, 0, 1, 1], [], []>} : vector<8x8xbf16>, vector<8x64xbf16>, vector<8x64xf32> -> vector<8x64xf32>
    %32 = arith.truncf %31 : vector<8x64xf32> to vector<8x64xbf16>
    %c0_18 = arith.constant 0 : index
    %c0_19 = arith.constant 0 : index
    %33 = vector.load %arg6[%c0_18, %c0_19] : memref<256x32xbf16, #tpu.memory_space<vmem>>, vector<64x32xbf16>
    %cst_20 = arith.constant dense<0.000000e+00> : vector<8x32xf32>
    %34 = tpu.matmul %32, %33, %cst_20 {dimension_numbers = #tpu.dot_dimension_numbers<[1], [0], [0], [1], [0, 0, 1, 1], [], []>} : vector<8x64xbf16>, vector<64x32xbf16>, vector<8x32xf32> -> vector<8x32xf32>
    %35 = arith.addf %15, %34 : vector<8x32xf32>
    %36 = vector.extract_strided_slice %8 {offsets = [0, 64], sizes = [8, 64], strides = [1, 1]} : vector<8x256xbf16> to vector<8x64xbf16>
    %37 = vector.extract_strided_slice %11 {offsets = [0, 64], sizes = [8, 64], strides = [1, 1]} : vector<8x256xbf16> to vector<8x64xbf16>
    %38 = vector.extract_strided_slice %14 {offsets = [0, 64], sizes = [8, 64], strides = [1, 1]} : vector<8x256xbf16> to vector<8x64xbf16>
    %cst_21 = arith.constant dense<0.000000e+00> : vector<8x8xf32>
    %39 = tpu.matmul %36, %37, %cst_21 {dimension_numbers = #tpu.dot_dimension_numbers<[1], [1], [0], [0], [0, 0, 1, 0], [], []>} : vector<8x64xbf16>, vector<8x64xbf16>, vector<8x8xf32> -> vector<8x8xf32>
    %cst_22 = arith.constant dense<0xFF800000> : vector<8xf32>
    %40 = vector.multi_reduction <maximumf>, %39, %cst_22 [1] : vector<8x8xf32> to vector<8xf32>
    %41 = vector.shape_cast %40 : vector<8xf32> to vector<8x1xf32>
    %42 = vector.broadcast %41 : vector<8x1xf32> to vector<8x8xf32>
    %43 = arith.subf %39, %42 : vector<8x8xf32>
    %44 = math.exp %43 : vector<8x8xf32>
    %cst_23 = arith.constant dense<0.000000e+00> : vector<8xf32>
    %45 = vector.multi_reduction <add>, %44, %cst_23 [1] : vector<8x8xf32> to vector<8xf32>
    %46 = vector.shape_cast %45 : vector<8xf32> to vector<8x1xf32>
    %47 = tpu.reciprocal %46 {approx = true} : vector<8x1xf32> -> vector<8x1xf32>
    %48 = vector.broadcast %47 : vector<8x1xf32> to vector<8x8xf32>
    %49 = arith.mulf %44, %48 : vector<8x8xf32>
    %50 = arith.truncf %49 : vector<8x8xf32> to vector<8x8xbf16>
    %cst_24 = arith.constant dense<0.000000e+00> : vector<8x64xf32>
    %51 = tpu.matmul %50, %38, %cst_24 {dimension_numbers = #tpu.dot_dimension_numbers<[1], [0], [0], [1], [0, 0, 1, 1], [], []>} : vector<8x8xbf16>, vector<8x64xbf16>, vector<8x64xf32> -> vector<8x64xf32>
    %52 = arith.truncf %51 : vector<8x64xf32> to vector<8x64xbf16>
    %c64 = arith.constant 64 : index
    %c0_25 = arith.constant 0 : index
    %53 = vector.load %arg6[%c64, %c0_25] : memref<256x32xbf16, #tpu.memory_space<vmem>>, vector<64x32xbf16>
    %cst_26 = arith.constant dense<0.000000e+00> : vector<8x32xf32>
    %54 = tpu.matmul %52, %53, %cst_26 {dimension_numbers = #tpu.dot_dimension_numbers<[1], [0], [0], [1], [0, 0, 1, 1], [], []>} : vector<8x64xbf16>, vector<64x32xbf16>, vector<8x32xf32> -> vector<8x32xf32>
    %55 = arith.addf %35, %54 : vector<8x32xf32>
    %56 = vector.extract_strided_slice %8 {offsets = [0, 128], sizes = [8, 64], strides = [1, 1]} : vector<8x256xbf16> to vector<8x64xbf16>
    %57 = vector.extract_strided_slice %11 {offsets = [0, 128], sizes = [8, 64], strides = [1, 1]} : vector<8x256xbf16> to vector<8x64xbf16>
    %58 = vector.extract_strided_slice %14 {offsets = [0, 128], sizes = [8, 64], strides = [1, 1]} : vector<8x256xbf16> to vector<8x64xbf16>
    %cst_27 = arith.constant dense<0.000000e+00> : vector<8x8xf32>
    %59 = tpu.matmul %56, %57, %cst_27 {dimension_numbers = #tpu.dot_dimension_numbers<[1], [1], [0], [0], [0, 0, 1, 0], [], []>} : vector<8x64xbf16>, vector<8x64xbf16>, vector<8x8xf32> -> vector<8x8xf32>
    %cst_28 = arith.constant dense<0xFF800000> : vector<8xf32>
    %60 = vector.multi_reduction <maximumf>, %59, %cst_28 [1] : vector<8x8xf32> to vector<8xf32>
    %61 = vector.shape_cast %60 : vector<8xf32> to vector<8x1xf32>
    %62 = vector.broadcast %61 : vector<8x1xf32> to vector<8x8xf32>
    %63 = arith.subf %59, %62 : vector<8x8xf32>
    %64 = math.exp %63 : vector<8x8xf32>
    %cst_29 = arith.constant dense<0.000000e+00> : vector<8xf32>
    %65 = vector.multi_reduction <add>, %64, %cst_29 [1] : vector<8x8xf32> to vector<8xf32>
    %66 = vector.shape_cast %65 : vector<8xf32> to vector<8x1xf32>
    %67 = tpu.reciprocal %66 {approx = true} : vector<8x1xf32> -> vector<8x1xf32>
    %68 = vector.broadcast %67 : vector<8x1xf32> to vector<8x8xf32>
    %69 = arith.mulf %64, %68 : vector<8x8xf32>
    %70 = arith.truncf %69 : vector<8x8xf32> to vector<8x8xbf16>
    %cst_30 = arith.constant dense<0.000000e+00> : vector<8x64xf32>
    %71 = tpu.matmul %70, %58, %cst_30 {dimension_numbers = #tpu.dot_dimension_numbers<[1], [0], [0], [1], [0, 0, 1, 1], [], []>} : vector<8x8xbf16>, vector<8x64xbf16>, vector<8x64xf32> -> vector<8x64xf32>
    %72 = arith.truncf %71 : vector<8x64xf32> to vector<8x64xbf16>
    %c128 = arith.constant 128 : index
    %c0_31 = arith.constant 0 : index
    %73 = vector.load %arg6[%c128, %c0_31] : memref<256x32xbf16, #tpu.memory_space<vmem>>, vector<64x32xbf16>
    %cst_32 = arith.constant dense<0.000000e+00> : vector<8x32xf32>
    %74 = tpu.matmul %72, %73, %cst_32 {dimension_numbers = #tpu.dot_dimension_numbers<[1], [0], [0], [1], [0, 0, 1, 1], [], []>} : vector<8x64xbf16>, vector<64x32xbf16>, vector<8x32xf32> -> vector<8x32xf32>
    %75 = arith.addf %55, %74 : vector<8x32xf32>
    %76 = vector.extract_strided_slice %8 {offsets = [0, 192], sizes = [8, 64], strides = [1, 1]} : vector<8x256xbf16> to vector<8x64xbf16>
    %77 = vector.extract_strided_slice %11 {offsets = [0, 192], sizes = [8, 64], strides = [1, 1]} : vector<8x256xbf16> to vector<8x64xbf16>
    %78 = vector.extract_strided_slice %14 {offsets = [0, 192], sizes = [8, 64], strides = [1, 1]} : vector<8x256xbf16> to vector<8x64xbf16>
    %cst_33 = arith.constant dense<0.000000e+00> : vector<8x8xf32>
    %79 = tpu.matmul %76, %77, %cst_33 {dimension_numbers = #tpu.dot_dimension_numbers<[1], [1], [0], [0], [0, 0, 1, 0], [], []>} : vector<8x64xbf16>, vector<8x64xbf16>, vector<8x8xf32> -> vector<8x8xf32>
    %cst_34 = arith.constant dense<0xFF800000> : vector<8xf32>
    %80 = vector.multi_reduction <maximumf>, %79, %cst_34 [1] : vector<8x8xf32> to vector<8xf32>
    %81 = vector.shape_cast %80 : vector<8xf32> to vector<8x1xf32>
    %82 = vector.broadcast %81 : vector<8x1xf32> to vector<8x8xf32>
    %83 = arith.subf %79, %82 : vector<8x8xf32>
    %84 = math.exp %83 : vector<8x8xf32>
    %cst_35 = arith.constant dense<0.000000e+00> : vector<8xf32>
    %85 = vector.multi_reduction <add>, %84, %cst_35 [1] : vector<8x8xf32> to vector<8xf32>
    %86 = vector.shape_cast %85 : vector<8xf32> to vector<8x1xf32>
    %87 = tpu.reciprocal %86 {approx = true} : vector<8x1xf32> -> vector<8x1xf32>
    %88 = vector.broadcast %87 : vector<8x1xf32> to vector<8x8xf32>
    %89 = arith.mulf %84, %88 : vector<8x8xf32>
    %90 = arith.truncf %89 : vector<8x8xf32> to vector<8x8xbf16>
    %cst_36 = arith.constant dense<0.000000e+00> : vector<8x64xf32>
    %91 = tpu.matmul %90, %78, %cst_36 {dimension_numbers = #tpu.dot_dimension_numbers<[1], [0], [0], [1], [0, 0, 1, 1], [], []>} : vector<8x8xbf16>, vector<8x64xbf16>, vector<8x64xf32> -> vector<8x64xf32>
    %92 = arith.truncf %91 : vector<8x64xf32> to vector<8x64xbf16>
    %c192 = arith.constant 192 : index
    %c0_37 = arith.constant 0 : index
    %93 = vector.load %arg6[%c192, %c0_37] : memref<256x32xbf16, #tpu.memory_space<vmem>>, vector<64x32xbf16>
    %cst_38 = arith.constant dense<0.000000e+00> : vector<8x32xf32>
    %94 = tpu.matmul %92, %93, %cst_38 {dimension_numbers = #tpu.dot_dimension_numbers<[1], [0], [0], [1], [0, 0, 1, 1], [], []>} : vector<8x64xbf16>, vector<64x32xbf16>, vector<8x32xf32> -> vector<8x32xf32>
    %95 = arith.addf %75, %94 : vector<8x32xf32>
    %c0_39 = arith.constant 0 : index
    %c0_40 = arith.constant 0 : index
    %96 = vector.load %arg7[%c0_39, %c0_40] : memref<1x32xf32, #tpu.memory_space<vmem>>, vector<1x32xf32>
    %97 = vector.broadcast %96 : vector<1x32xf32> to vector<8x32xf32>
    %98 = arith.addf %95, %97 : vector<8x32xf32>
    %c0_41 = arith.constant 0 : index
    %c0_42 = arith.constant 0 : index
    %c0_43 = arith.constant 0 : index
    %99 = vector.load %arg8[%c0_41, %c0_42, %c0_43] : memref<1x8x32xf32, #tpu.memory_space<vmem>>, vector<1x8x32xf32>
    %100 = vector.shape_cast %99 : vector<1x8x32xf32> to vector<8x32xf32>
    %101 = vector.shape_cast %98 : vector<8x32xf32> to vector<1x8x32xf32>
    tpu.vector_store %arg8[%c0_41, %c0_42, %c0_43], %101 {strides = array<i32>} : memref<1x8x32xf32, #tpu.memory_space<vmem>>, vector<1x8x32xf32>,
    return
  }
  func.func @transform_0(%arg0: i32) -> (i32, i32, i32) {
    %c0_i32 = arith.constant 0 : i32
    %c0_i32_0 = arith.constant 0 : i32
    %c0_i32_1 = arith.constant 0 : i32
    return %arg0, %c0_i32, %c0_i32_0 : i32, i32, i32
  }
  func.func @transform_1(%arg0: i32) -> (i32, i32, i32) {
    %c0_i32 = arith.constant 0 : i32
    %c0_i32_0 = arith.constant 0 : i32
    %c0_i32_1 = arith.constant 0 : i32
    return %arg0, %c0_i32, %c0_i32_0 : i32, i32, i32
  }
  func.func @transform_2(%arg0: i32) -> (i32, i32) {
    %c0_i32 = arith.constant 0 : i32
    %c0_i32_0 = arith.constant 0 : i32
    %c0_i32_1 = arith.constant 0 : i32
    return %c0_i32, %c0_i32_0 : i32, i32
  }
  func.func @transform_3(%arg0: i32) -> (i32, i32) {
    %c0_i32 = arith.constant 0 : i32
    %c0_i32_0 = arith.constant 0 : i32
    %c0_i32_1 = arith.constant 0 : i32
    return %c0_i32, %c0_i32_0 : i32, i32
  }
  func.func @transform_4(%arg0: i32) -> (i32, i32) {
    %c0_i32 = arith.constant 0 : i32
    %c0_i32_0 = arith.constant 0 : i32
    %c0_i32_1 = arith.constant 0 : i32
    return %c0_i32, %c0_i32_0 : i32, i32
  }
  func.func @transform_5(%arg0: i32) -> (i32, i32) {
    %c0_i32 = arith.constant 0 : i32
    %c0_i32_0 = arith.constant 0 : i32
    %c0_i32_1 = arith.constant 0 : i32
    return %c0_i32, %c0_i32_0 : i32, i32
  }
  func.func @transform_6(%arg0: i32) -> (i32, i32) {
    %c0_i32 = arith.constant 0 : i32
    %c0_i32_0 = arith.constant 0 : i32
    %c0_i32_1 = arith.constant 0 : i32
    return %c0_i32, %c0_i32_0 : i32, i32
  }
  func.func @transform_7(%arg0: i32) -> (i32, i32, i32) {
    %c0_i32 = arith.constant 0 : i32
    %c0_i32_0 = arith.constant 0 : i32
    %c0_i32_1 = arith.constant 0 : i32
    return %arg0, %c0_i32, %c0_i32_0 : i32, i32, i32
  }
}

</mosaic_0001>

<bundles_post_ra>
// kernel: tpu_custom_call.1
= control target key start
LH: loop header
LB: loop body
LE: loop exit
PB: predicated region body
PF: predicated region fallthrough
CT: control target
= control target key end

     0   :  { %12 = vsyncpa [#allocation3], 0  ;;  %s1635_s0 = inlined_call_operand.vmem [shape: f32[2,8,32], index: 0, kind: input, shape index: {}]   ;;  %s1636_s1 = inlined_call_operand.vmem [shape: f32[2,8,48], index: 1, kind: input, shape index: {}]   ;;  %s1637_s2 = inlined_call_operand.vmem [shape: bf16[32,256], index: 2, kind: input, shape index: {}]   ;;  %s1638_s3 = inlined_call_operand.vmem [shape: bf16[48,256], index: 3, kind: input, shape index: {}]   ;;  %s1639_s4 = inlined_call_operand.vmem [shape: bf16[48,256], index: 4, kind: input, shape index: {}]   ;;  %s1640_s5 = inlined_call_operand.vmem [shape: bf16[256,32], index: 5, kind: input, shape index: {}]   ;;  %s1641_s6 = inlined_call_operand.vmem [shape: f32[1,32], index: 6, kind: input, shape index: {}]   ;;  %s1642_s7 = inlined_call_operand.hbm [shape: f32[2,8,32], index: 7, kind: output, shape index: {}]  }
   0x1   :  { %14 = vsyncpa [#allocation3 + $0x1], 0  ;;  %s1353_s24 = smov 0   ;;  %s1355_s25 = smov 0  }
   0x2   :  { %s1357_s26 = smov 0   ;;  %s1359_s27 = smov 0  }
   0x3 LB: > { %s1374_s28 = sadd.s32 4294967295, %s1310_s27   ;;  %s1002_s29 = sadd.s32 4294967294, %s1310_s27   ;;  %s1310_s27 = sphi %s1359_s27, %s1648_s27   ;;  %s1306_s26 = sphi %s1357_s26, %s1647_s26   ;;  %s1302_s25 = sphi %s1355_s25, %s1646_s25   ;;  %s1298_s24 = sphi %s1353_s24, %s1645_s24  }
   0x4   : > { %s1378_s30 = sadd.s32 1, %s1310_s27   ;;  %s184_s8 = sadd.s32 1, %s1306_s26 }
   0x5   : > { %s181_s9 = ssub.s32 %s1310_s27, %s1378_s30  ;;  %p194_p0 = scmp.ne.s32.totalorder %s1306_s26, %s1302_s25 }
   0x6   : > { %p182_p1 = scmp.eq.s32.totalorder %s181_s9, 0  ;;  %p195_p2 = scmp.eq.s32.totalorder %s1374_s28, 1 }
   0x7   : > { %p200_p3 = scmp.ne.s32.totalorder %s1302_s25, %s1298_s24  ;;  %p201_p4 = scmp.eq.s32.totalorder %s1002_s29, 1 }
   0x8   : > { %s1389_s10 = scalar_select %p182_p1, %s1306_s26, %s184_s8  }
   0x9   : > { %p1391_p5 = por %p195_p2, %p194_p0  ;;  %p1395_p6 = por %p201_p4, %p200_p3 }
   0xa   : > { %p1005_p7 = scmp.ge.s32.totalorder %s1310_s27, 1  ;;  %p248_p8 = scmp.lt.s32.totalorder %s1310_s27, 3 }
   0xc   : > { %p249_p9 = pnand %p1005_p7, %p248_p8 }
   0xd   : > { %p283_p10 = scmp.lt.s32.totalorder (!%p249_p9), %s1374_s28, 1  ;;  %s280_s22 = sand.u32 (!%p249_p9), 1, %s1302_s25  }
   0xe   : > { %252 = sbr.rel (%p249_p9) target bundleno = 1364 (0x554), region = 48  ;;  %s1006_s23 = sshll.u32 (!%p249_p9), %s280_s22, 3 }
   0xf   : > { %s1156_s29 = sshll.u32 (!%p249_p9), %s1374_s28, 3 }
  0x13   : > { %v1045_v0 = vld [vmem:[%s1638_s3 + $0x20] sm:$0xf]  ;;  %v1168_v1 = vld [vmem:[%s1638_s3 + $0x24] sm:$0xf0]  ;;  %v1167_v2 = vld [vmem:[%s1638_s3 + $0x24] sm:$0xf] }
  0x14   : > { %v1046_v3 = vor.u32 %v1168_v1, %v1045_v0  ;;  %v1047_v4 = vld [vmem:[%s1638_s3 + $0x28] sm:$0xf0]  ;;  %v1037_v5 = vld [vmem:[%s1638_s3 + $0x10] sm:$0xf]  ;;  %v1166_v6 = vld [vmem:[%s1638_s3 + $0x14] sm:$0xf0] }
  0x15   : > { %v1050_v7 = vor.u32 %v1167_v2, %v1047_v4  ;;  %v1165_v8 = vld [vmem:[%s1638_s3 + $0x14] sm:$0xf]  ;;  %v1039_v9 = vld [vmem:[%s1638_s3 + $0x18] sm:$0xf0]  ;;  %v1029_v10 = vld [vmem:[%s1638_s3] sm:$0xf]  ;;  %v1038_v11 = vor.u32 %v1166_v6, %v1037_v5 }
  0x16   : > { %396 = vmatpush.bf16.msra.mxu2 %v1046_v3  ;;  %v1164_v12 = vld [vmem:[%s1638_s3 + $0x4] sm:$0xf0]  ;;  %v1163_v13 = vld [vmem:[%s1638_s3 + $0x4] sm:$0xf]  ;;  %v1031_v14 = vld [vmem:[%s1638_s3 + $0x8] sm:$0xf0]  ;;  %v1042_v15 = vor.u32 %v1165_v8, %v1039_v9 }
  0x17   : > { %409 = vmatpush.bf16.msra.mxu3 %v1050_v7  ;;  %v1019_v16 = vld [vmem:[%s1637_s2 + $0x10] sm:$0xf]  ;;  %v1162_v17 = vld [vmem:[%s1637_s2 + $0x14] sm:$0xf0]  ;;  %v1161_v19 = vld [vmem:[%s1637_s2 + $0x14] sm:$0xf]  ;;  %v1030_v25 = vor.u32 %v1164_v12, %v1029_v10  ;;  %v1034_v28 = vor.u32 %v1163_v13, %v1031_v14 }
  0x18   : > { %v1020_v18 = vor.u32 %v1162_v17, %v1019_v16  ;;  %v1021_v20 = vld [vmem:[%s1637_s2 + $0x18] sm:$0xf0]  ;;  %v1011_v21 = vld [vmem:[%s1637_s2] sm:$0xf]  ;;  %s284_s19 = scalar_select %p283_p10, %s1374_s28, 1  ;;  %vm387_vm0 = vcmask 392192  }
  0x19   : > { %v1024_v22 = vor.u32 %v1161_v19, %v1021_v20  ;;  %v1160_v23 = vld [vmem:[%s1637_s2 + $0x4] sm:$0xf0]  ;;  %v1159_v24 = vld [vmem:[%s1637_s2 + $0x4] sm:$0xf]  ;;  %v1013_v27 = vld [vmem:[%s1637_s2 + $0x8] sm:$0xf0] }
  0x1a   : > { %397 = vmatpush.bf16.msra.mxu2 %v1038_v11  ;;  %330 = vmatpush.bf16.msra.mxu0 %v1020_v18  ;;  %v1012_v26 = vor.u32 %v1160_v23, %v1011_v21  ;;  %s1007_s9 = sshll.u32 %s284_s19, 3  ;;  %v1016_v29 = vor.u32 %v1159_v24, %v1013_v27  ;;  %vm320_vm1 = vcmask 261120   ;;  %vm481_vm2 = vcmask 523264   ;;  %s1312_s19 = smov 64   ;;  %v1071_v53 = vld [vmem:[%s1639_s4 + $0x20] sm:$0xf] }
  0x1b   : > { %410 = vmatpush.bf16.msra.mxu3 %v1042_v15  ;;  %343 = vmatpush.bf16.msra.mxu1 %v1024_v22  ;;  %s290_s15 = scalar_lea.vmem %s1636_s1, %s1007_s9  ;;  %s286_s18 = scalar_lea.vmem %s1635_s0, %s1007_s9  ;;  %v1174_v54 = vld [vmem:[%s1639_s4 + $0x24] sm:$0xf0]  ;;  %v1063_v55 = vld [vmem:[%s1639_s4 + $0x10] sm:$0xf]  ;;  %v1172_v57 = vld [vmem:[%s1639_s4 + $0x14] sm:$0xf0] }
  0x1c   : > { %v294_v30 = vld [vmem:[%s290_s15] sm:$0xff]  ;;  %v1072_v56 = vor.u32 %v1174_v54, %v1071_v53  ;;  %v1064_v58 = vor.u32 %v1172_v57, %v1063_v55  ;;  %v1170_v60 = vld [vmem:[%s1639_s4 + $0x4] sm:$0xf0]  ;;  %vm501_vm3 = vcmask 64512   ;;  %v1073_v6 = vld [vmem:[%s1639_s4 + $0x28] sm:$0xf0]  ;;  %s926_s9 = scalar_lea.hbm %s1642_s7, %s1156_s29 }
  0x1d   : > { %v292_v31 = vld [vmem:[%s286_s18] sm:$0xff]  ;;  %v1469_v32 = vpack.c.bf16 %v294_v30, %v294_v30  ;;  %v1171_v8 = vld [vmem:[%s1639_s4 + $0x14] sm:$0xf]  ;;  %v1065_v9 = vld [vmem:[%s1639_s4 + $0x18] sm:$0xf0]  ;;  %vm517_vm4 = vcmask 1043456  }
  0x1e   : > { %398 = vmatpush.bf16.msra.mxu2 %v1030_v25  ;;  %331 = vmatpush.bf16.msra.mxu0 %v1012_v26  ;;  %v293_v33 = vpack.c.bf16 %v292_v31, %v292_v31  ;;  %v1055_v59 = vld [vmem:[%s1639_s4] sm:$0xf]  ;;  %v1173_v5 = vld [vmem:[%s1639_s4 + $0x24] sm:$0xf]  ;;  %v1068_v11 = vor.u32 %v1171_v8, %v1065_v9  ;;  %v1057_v12 = vld [vmem:[%s1639_s4 + $0x8] sm:$0xf0] }
  0x1f   : > { %411 = vmatpush.bf16.msra.mxu3 %v1034_v28  ;;  %344 = vmatpush.bf16.msra.mxu1 %v1016_v29  ;;  %v1056_v61 = vor.u32 %v1170_v60, %v1055_v59  ;;  %v1076_v7 = vor.u32 %v1173_v5, %v1073_v6  ;;  %v1169_v10 = vld [vmem:[%s1639_s4 + $0x4] sm:$0xf]  ;;  %v1178_v29 = vld [vmem:[%s1640_s5 + $0x18] sm:$0xff]  ;;  %v1181_v5 = vld [vmem:[%s1640_s5 + $0x30] sm:$0xff]  ;;  %s282_s15 = scalar_lea.vmem [#allocation2], %s1006_s23  ;;  %s930_s17 = sshll.u32 %s926_s9, 4  ;;  %s931_s17 = int_to_ptr.hbm [resolvable:$true] %s930_s17 }
  0x20   : > { %v1060_v13 = vor.u32 %v1169_v10, %v1057_v12  ;;  %v1180_v10 = vld [vmem:[%s1640_s5 + $0x28] sm:$0xff]  ;;  %v1186_v12 = vld [vmem:[%s1640_s5 + $0x58] sm:$0xff]  ;;  %s928_s16 = sshll.u32 %s282_s15, 4  ;;  %s916_s28 = scalar_lea.sflag [#allocation3], %s280_s22  ;;  %s929_s16 = int_to_ptr.vmem [resolvable:$true] %s928_s16 }
  0x21   : > { %1051 = vmatmul.msk.bf16.vlgmr.msra.gmra.mxu2 %vm387_vm0, %v1469_v32  ;;  %1025 = vmatmul.msk.bf16.vlgmr.msra.gmra.mxu0 %vm320_vm1, %v293_v33  ;;  %s1262_s18 = sshra.s32 %s931_s17, 4  ;;  %s1268_s23 = scalar_lea.hbm %s1642_s7, 16  ;;  %s1263_s18 = int_to_ptr.hbm [resolvable:$true] %s1262_s18 }
  0x22   : > { %1052 = vmatmul.msk.bf16.vlgmr.msra.gmra.mxu3 %vm387_vm0, %v1469_v32  ;;  %1026 = vmatmul.msk.bf16.vlgmr.msra.gmra.mxu1 %vm320_vm1, %v293_v33  ;;  %v1176_v33 = vld [vmem:[%s1640_s5 + $0x8] sm:$0xff]  ;;  %s1264_s20 = scalar_lea.hbm %s1263_s18, 8  ;;  %p1269_p0 = scmp.lt.s32.totalorder %s1263_s18, %s1642_s7 }
  0x23   : > { %459 = vmatpush.bf16.msrb.mxu0 %v1072_v56  ;;  %472 = vmatpush.bf16.msrb.mxu1 %v1076_v7  ;;  %p1265_p11 = scmp.ne.s32.totalorder %s1263_s18, %s1264_s20  ;;  %p1270_p1 = scmp.lt.s32.totalorder %s1268_s23, %s1264_s20 }
  0x25   : > { %p1266_p12 = pnand %p1265_p11, %p1391_p5  ;;  %p1271_p2 = por %p1270_p1, %p1269_p0 }
  0x27   : > { %460 = vmatpush.bf16.msrb.mxu0 %v1064_v58  ;;  %473 = vmatpush.bf16.msrb.mxu1 %v1068_v11  ;;  %v1179_v11 = vld [vmem:[%s1640_s5 + $0x20] sm:$0xff]  ;;  %p1267_p13 = pneg %p1266_p12 }
  0x29   : > { %p1272_p3 = pnand %p1271_p2, %p1267_p13 }
  0x2b   : > { %461 = vmatpush.bf16.msrb.mxu0 %v1056_v61  ;;  %474 = vmatpush.bf16.msrb.mxu1 %v1060_v13  ;;  %v1185_v13 = vld [vmem:[%s1640_s5 + $0x50] sm:$0xff] }
  0x31   : > { %1077 = vmatmul.msk.bf16.vlgmr.msrb.gmra.mxu0 %vm387_vm0, %v1469_v32 }
  0x32   : > { %1078 = vmatmul.msk.bf16.vlgmr.msrb.gmra.mxu1 %vm387_vm0, %v1469_v32  ;;  %v1177_v32 = vld [vmem:[%s1640_s5 + $0x10] sm:$0xff] }
  0x9e   : > { %v333_v34 = vpop.f32.mrf.mxu0 }
  0x9f   : > { %v346_v35 = vpop.f32.mrf.mxu1 }
  0xa0   : > { %v350_v44 = vpack.c.bf16 %v346_v35, %v333_v34  ;;  %v1175_v35 = vld [vmem:[%s1640_s5] sm:$0xff] }
  0xa2   : > { %v544_v48 = vunpack.c.l.b16 %v350_v44  ;;  %v697_v49 = vunpack.c.h.b16 %v350_v44 }
  0xa4   : > { %v400_v36 = vpop.f32.mrf.mxu2  ;;  %v545_v51 = vpack.c.b16 %v544_v48, %v544_v48  ;;  %v698_v52 = vpack.c.b16 %v697_v49, %v697_v49 }
  0xa5   : > { %v413_v37 = vpop.f32.mrf.mxu3 }
  0xa6   : > { %v417_v38 = vpack.c.bf16 %v413_v37, %v400_v36  ;;  %v335_v39 = vpop.f32.mrf.mxu0 }
  0xa7   : > { %v348_v40 = vpop.f32.mrf.mxu1 }
  0xa8   : > { %v486_v41 = vsel %vm481_vm2, %v417_v38, 0  ;;  %v699_v42 = vunpack.c.h.b16 %v417_v38  ;;  %v549_v43 = vunpack.c.l.b16 %v417_v38 }
  0xa9   : > { %495 = vmatpush.bf16.xpose.msrb.mxu2 %v486_v41 }
  0xaa   : > { %v700_v45 = vpack.c.b16 %v699_v42, %v699_v42  ;;  %v550_v46 = vpack.c.b16 %v549_v43, %v549_v43 }
  0xac   : > { %805 = vrot.lane.b32.xlu2 %v700_v45, %s1312_s19  ;;  %551 = vrot.lane.b32.xlu1 %v550_v46, %s1312_s19  ;;  %v402_v47 = vpop.f32.mrf.mxu2  ;;  %v705_v0 = vsel %vm481_vm2, %v700_v45, 0 }
  0xad   : > { %v415_v50 = vpop.f32.mrf.mxu3 }
  0xae   : > { %v463_v14 = vpop.f32.mrf.mxu0 }
  0xaf   : > { %v476_v27 = vpop.f32.mrf.mxu1 }
  0xb0   : > { %1079 = vmatmul.msk.bf16.vlgmr.msrb.gmra.mxu2 %vm481_vm2, %v350_v44  ;;  %v480_v28 = vpack.c.bf16 %v476_v27, %v463_v14  ;;  %v1184_v14 = vld [vmem:[%s1640_s5 + $0x48] sm:$0xff] }
  0xb2   : > { %v519_v30 = vsel %vm517_vm4, %v480_v28, 0  ;;  %v732_v34 = vunpack.c.h.b16 %v480_v28  ;;  %v585_v48 = vunpack.c.l.b16 %v480_v28 }
  0xb3   : > { %528 = vmatpush.bf16.msrb.mxu3 %v519_v30 }
  0xb4   : > { %546 = vrot.lane.b32.xlu1 %v545_v51, %s1312_s19  ;;  %803 = vrot.lane.b32.xlu2 %v698_v52, %s1312_s19  ;;  %v733_v36 = vpack.c.b16 %v732_v34, %v732_v34  ;;  %v586_v49 = vpack.c.b16 %v585_v48, %v585_v48 }
  0xb6   : > { %v465_v15 = vpop.f32.mrf.mxu0 }
  0xb7   : > { %688 = vmatpush.bf16.msra.mxu3 %v1178_v29  ;;  %v478_v31 = vpop.f32.mrf.mxu1 }
  0xbb   : > { %689 = vmatpush.bf16.msra.mxu3 %v1177_v32 }
  0xbf   : > { %690 = vmatpush.bf16.msra.mxu3 %v1176_v33 }
  0xc3   : > { %691 = vmatpush.bf16.msra.mxu3 %v1175_v35 }
 0x106   : > { %v806_v41 = vpop.permute.xlu2 %805 }
 0x107   : > { %v811_v45 = vsel %vm481_vm2, %v806_v41, 0 }
 0x11e   : > { %v552_v62 = vpop.permute.xlu1 %551 }
 0x11f   : > { %v557_v63 = vsel %vm481_vm2, %v552_v62, 0 }
 0x120   : > { %566 = vmatpush.bf16.xpose.msra.mxu0 %v557_v63 }
 0x126   : > { %v547_v1 = vpop.permute.xlu1 %546 }
 0x127   : > { %1081 = vmatmul.msk.bf16.vlgmr.msra.gmra.mxu0 %vm481_vm2, %v547_v1  ;;  %v738_v1 = vsel %vm517_vm4, %v733_v36, 0 }
 0x128   : > { %714 = vmatpush.bf16.xpose.msrb.mxu0 %v705_v0 }
 0x133   : > { %v497_v2 = vpop.f32.mrf.mxu2 }
 0x134   : > { %v502_v3 = vsel %vm501_vm3, %v497_v2, -inf }
 0x135   : > { %503 = vmax.xlane.f32.xlu0 %v502_v3  ;;  %v804_v3 = vpop.permute.xlu2 %803 }
 0x137   : > { %1117 = vmatmul.msk.bf16.vlgmr.msrb.gmra.mxu0 %vm481_vm2, %v698_v52 }
 0x13b   : > { %v499_v4 = vpop.f32.mrf.mxu2 }
 0x13c   : > { %v1182_v4 = vld [vmem:[%s1640_s5 + $0x38] sm:$0xff] }
 0x13d   : > { %648 = vmatpush.bf16.msra.mxu2 %v1182_v4 }
 0x141   : > { %649 = vmatpush.bf16.msra.mxu2 %v1181_v5 }
 0x145   : > { %650 = vmatpush.bf16.msra.mxu2 %v1180_v10 }
 0x149   : > { %651 = vmatpush.bf16.msra.mxu2 %v1179_v11 }
 0x14d   : > { %793 = vmatpush.bf16.msrb.mxu2 %v1186_v12 }
 0x151   : > { %794 = vmatpush.bf16.msrb.mxu2 %v1185_v13 }
 0x155   : > { %795 = vmatpush.bf16.msrb.mxu2 %v1184_v14 }
 0x1a4   : > { %v568_v16 = vpop.f32.mrf.mxu0 }
 0x1a5   : > { %v572_v26 = vsel %vm501_vm3, %v568_v16, -inf }
 0x1a8   : > { %v504_v17 = vpop.xlane.xlu0 %503 }
 0x1a9   : > { %v505_v18 = vsub.f32 %v497_v2, %v504_v17 }
 0x1ab   : > { %v506_v19 = vmul.f32 1.442695, %v505_v18 }
 0x1ac   : > { %v570_v20 = vpop.f32.mrf.mxu0 }
 0x1ad   : > { %1232 = vpow2.f32 %v506_v19 }
 0x1b3   : > { %v1233_v21 = vpop.eup %1232 }
 0x1b4   : > { %v716_v22 = vpop.f32.mrf.mxu0  ;;  %v508_v23 = vsel %vm501_vm3, %v1233_v21, 0.0 }
 0x1b5   : > { %509 = vadd.xlane.f32.xlu0 %v508_v23  ;;  %v720_v24 = vsel %vm501_vm3, %v716_v22, -inf  ;;  %v1183_v23 = vld [vmem:[%s1640_s5 + $0x40] sm:$0xff] }
 0x1b6   : > { %721 = vmax.xlane.f32.xlu1 %v720_v24  ;;  %796 = vmatpush.bf16.msrb.mxu2 %v1183_v23 }
 0x1bc   : > { %v718_v25 = vpop.f32.mrf.mxu0 }
 0x1bd   : > { %573 = vmax.xlane.f32.xlu0 %v572_v26 }
 0x1cf   : > { %838 = vrot.lane.b32.xlu1 %v733_v36, %s1312_s19 }
 0x228   : > { %v510_v37 = vpop.xlane.xlu0 %509 }
 0x229   : > { %1234 = vrcp.f32 %v510_v37  ;;  %v722_v50 = vpop.xlane.xlu1 %721 }
 0x22a   : > { %v723_v51 = vsub.f32 %v716_v22, %v722_v50 }
 0x22c   : > { %v724_v52 = vmul.f32 1.442695, %v723_v51 }
 0x22f   : > { %v1235_v38 = vpop.eup %1234 }
 0x230   : > { %v512_v39 = vmul.f32 %v1235_v38, %v1233_v21  ;;  %v574_v40 = vpop.xlane.xlu0 %573  ;;  %v1190_v38 = vld [vmem:[%s1640_s5 + $0x78] sm:$0xff] }
 0x231   : > { %v575_v42 = vsub.f32 %v568_v16, %v574_v40  ;;  %v1188_v40 = vld [vmem:[%s1640_s5 + $0x68] sm:$0xff] }
 0x232   : > { %v513_v43 = vpack.c.bf16 %v512_v39, %v512_v39  ;;  %v1189_v39 = vld [vmem:[%s1640_s5 + $0x70] sm:$0xff] }
 0x233   : > { %v576_v44 = vmul.f32 1.442695, %v575_v42 }
 0x234   : > { %1080 = vmatmul.msk.bf16.vlgmr.msrb.gmra.mxu3 %vm501_vm3, %v513_v43 }
 0x235   : > { %1236 = vpow2.f32 %v576_v44  ;;  %820 = vmatpush.bf16.xpose.msrb.mxu3 %v811_v45  ;;  %v1187_v45 = vld [vmem:[%s1640_s5 + $0x60] sm:$0xff] }
 0x236   : > { %1238 = vpow2.f32 %v724_v52 }
 0x23b   : > { %v1237_v46 = vpop.eup %1236 }
 0x23c   : > { %v578_v47 = vsel %vm501_vm3, %v1237_v46, 0.0  ;;  %v1239_v53 = vpop.eup %1238 }
 0x23d   : > { %579 = vadd.xlane.f32.xlu0 %v578_v47  ;;  %v726_v54 = vsel %vm501_vm3, %v1239_v53, 0.0 }
 0x241   : > { %v839_v55 = vpop.permute.xlu1 %838 }
 0x242   : > { %v844_v56 = vsel %vm517_vm4, %v839_v55, 0 }
 0x243   : > { %853 = vmatpush.bf16.msra.mxu0 %v844_v56 }
 0x251   : > { %587 = vrot.lane.b32.xlu0 %v586_v49, %s1312_s19  ;;  %v1231_v49 = vld [vmem:[%s1641_s6] ss:$0 sm:$0xff] }
 0x27b   : > { %727 = vadd.xlane.f32.xlu0 %v726_v54 }
 0x2b0   : > { %v580_v57 = vpop.xlane.xlu0 %579 }
 0x2b1   : > { %1240 = vrcp.f32 %v580_v57 }
 0x2b7   : > { %v530_v58 = vpop.f32.mrf.mxu3  ;;  %v1241_v60 = vpop.eup %1240 }
 0x2b8   : > { %v534_v59 = vpack.c.bf16 %v530_v58, %v530_v58  ;;  %v582_v62 = vmul.f32 %v1241_v60, %v1237_v46 }
 0x2ba   : > { %1116 = vmatmul.msk.bf16.vlgmr.msra.gmra.mxu3 %vm481_vm2, %v534_v59  ;;  %v583_v2 = vpack.c.bf16 %v582_v62, %v582_v62 }
 0x2bf   : > { %v532_v61 = vpop.f32.mrf.mxu3 }
 0x2c3   : > { %v588_v63 = vpop.permute.xlu0 %587 }
 0x2c4   : > { %v593_v0 = vsel %vm517_vm4, %v588_v63, 0 }
 0x2c5   : > { %602 = vmatpush.bf16.msra.mxu1 %v593_v0 }
 0x2c8   : > { %1082 = vmatmul.msk.bf16.vlgmr.msra.gmra.mxu1 %vm501_vm3, %v583_v2 }
 0x2c9   : > { %747 = vmatpush.bf16.msrb.mxu1 %v738_v1 }
 0x2ca   : > { %1136 = vmatmul.msk.bf16.vlgmr.msrb.gmra.mxu3 %vm481_vm2, %v804_v3 }
 0x2cd   : > { %899 = vmatpush.bf16.msra.mxu1 %v1190_v38 }
 0x2d1   : > { %900 = vmatpush.bf16.msra.mxu1 %v1189_v39 }
 0x2d5   : > { %901 = vmatpush.bf16.msra.mxu1 %v1188_v40 }
 0x2d9   : > { %902 = vmatpush.bf16.msra.mxu1 %v1187_v45 }
 0x2ee   : > { %v728_v6 = vpop.xlane.xlu0 %727 }
 0x2ef   : > { %1242 = vrcp.f32 %v728_v6 }
 0x2f5   : > { %v1243_v7 = vpop.eup %1242 }
 0x2f6   : > { %v730_v8 = vmul.f32 %v1243_v7, %v1239_v53 }
 0x2f8   : > { %v731_v9 = vpack.c.bf16 %v730_v8, %v730_v8 }
 0x2fa   : > { %1118 = vmatmul.msk.bf16.vlgmr.msrb.gmra.mxu1 %vm501_vm3, %v731_v9 }
 0x33d   : > { %v693_v15 = vpop.f32.mrf.mxu3 }
 0x345   : > { %v604_v16 = vpop.f32.mrf.mxu1  ;;  %v695_v17 = vpop.f32.mrf.mxu3 }
 0x346   : > { %v608_v18 = vpack.c.bf16 %v604_v16, %v604_v16 }
 0x348   : > { %1099 = vmatmul.msk.bf16.vlgmr.msra.gmra.mxu2 %vm481_vm2, %v608_v18 }
 0x34d   : > { %v606_v19 = vpop.f32.mrf.mxu1  ;;  %v822_v20 = vpop.f32.mrf.mxu3 }
 0x34e   : > { %v826_v21 = vsel %vm501_vm3, %v822_v20, -inf }
 0x34f   : > { %827 = vmax.xlane.f32.xlu2 %v826_v21 }
 0x355   : > { %v824_v22 = vpop.f32.mrf.mxu3 }
 0x377   : > { %v749_v24 = vpop.f32.mrf.mxu1 }
 0x378   : > { %v753_v25 = vpack.c.bf16 %v749_v24, %v749_v24 }
 0x37a   : > { %1135 = vmatmul.msk.bf16.vlgmr.msrb.gmra.mxu2 %vm481_vm2, %v753_v25 }
 0x37f   : > { %v751_v26 = vpop.f32.mrf.mxu1 }
 0x3c2   : > { %v828_v27 = vpop.xlane.xlu2 %827 }
 0x3c3   : > { %v829_v28 = vsub.f32 %v822_v20, %v828_v27 }
 0x3c5   : > { %v830_v29 = vmul.f32 1.442695, %v829_v28 }
 0x3c7   : > { %1244 = vpow2.f32 %v830_v29 }
 0x3cb   : > { %v653_v30 = vpop.f32.mrf.mxu2 }
 0x3cc   : > { %v694_v34 = vadd.f32 %v693_v15, %v653_v30 }
 0x3cd   : > { %v1245_v31 = vpop.eup %1244 }
 0x3ce   : > { %v832_v32 = vsel %vm501_vm3, %v1245_v31, 0.0 }
 0x3cf   : > { %833 = vadd.xlane.f32.xlu2 %v832_v32 }
 0x3d3   : > { %v655_v33 = vpop.f32.mrf.mxu2 }
 0x3fd   : > { %v798_v35 = vpop.f32.mrf.mxu2 }
 0x3fe   : > { %v802_v36 = vadd.f32 %v798_v35, %v694_v34 }
 0x405   : > { %v800_v37 = vpop.f32.mrf.mxu2 }
 0x442   : > { %v834_v41 = vpop.xlane.xlu2 %833 }
 0x443   : > { %1246 = vrcp.f32 %v834_v41 }
 0x449   : > { %v1247_v42 = vpop.eup %1246 }
 0x44a   : > { %v836_v43 = vmul.f32 %v1247_v42, %v1245_v31 }
 0x44c   : > { %v837_v44 = vpack.c.bf16 %v836_v43, %v836_v43 }
 0x44e   : > { %1137 = vmatmul.msk.bf16.vlgmr.msra.gmra.mxu0 %vm501_vm3, %v837_v44 }
 0x4cb   : > { %v855_v46 = vpop.f32.mrf.mxu0 }
 0x4cc   : > { %v859_v47 = vpack.c.bf16 %v855_v46, %v855_v46 }
 0x4ce   : > { %1154 = vmatmul.msk.bf16.vlgmr.msra.gmra.mxu1 %vm481_vm2, %v859_v47 }
 0x4d3   : > { %v857_v48 = vpop.f32.mrf.mxu0 }
 0x54b   : > { %v904_v50 = vpop.f32.mrf.mxu1 }
 0x54c   : > { %v908_v51 = vadd.f32 %v904_v50, %v802_v36 }
 0x54e   : > { %v913_v52 = vadd.f32 %v1231_v49, %v908_v51 }
 0x550   : > { %914 = vst.msk [vmem:[%s282_s15] sm:$0xff] %vm320_vm1, %v913_v52 }
 0x551   : > { %1275 = shalt.err (!%p1272_p3)
}
 0x552   : > { %1191 = dma.vmem_to_hbm [thread:$0]  (%p1391_p5), %s929_s16, 128, %s931_s17, %s916_s28  }
 0x553   : > { %v906_v53 = vpop.f32.mrf.mxu1 }
 0x554 PF: > { %p1197_p4 = scmp.ge.s32.totalorder %s1310_s27, 2  ;;  %s942_s22 = sand.u32 1, %s1298_s24  }
 0x555   : > { %s943_s9 = scalar_lea.sflag [#allocation3], %s942_s22 }
 0x556   : > { %p1194_p7 = pnand %p1197_p4, %p1395_p6 }
 0x558   : > { %p1195_p8 = pneg %p1194_p7 }
 0x55a   : > { %1293 = dma.done.wait (%p1195_p8), %s943_s9, 128  }
 0x55b   : > { %1295 = vsyncadd (%p1195_p8), %s943_s9, 4294967168  ;;  %p17_p9 = scmp.ge.s32.totalorder %s1378_s30, 4   ;;  %s1645_s24 = smov %s1302_s25 }
 0x55c   : > { %s1646_s25 = smov %s1306_s26  ;;  %s1647_s26 = smov %s1389_s10 }
 0x55d   : > { %s1648_s27 = smov %s1378_s30  ;;  %19 = sbr.rel (!%p17_p9) target bundleno = 3 (0x3), region = 86 }
 0x562   :  { %949 = vsyncpa [#allocation3], 1 }
 0x563   :  { %951 = vsyncpa [#allocation3 + $0x1], 1 }

</bundles_post_ra>
